<compile_context>
chip_gen: v7x
topology: tpu7x:2x2x1
jax: 0.10.0
libtpu: 0.0.40
codegen_flags: <defaults>
</compile_context>

<pallas_src>
import functools
import math

import jax
import jax.numpy as jnp
from jax import lax
from jax.experimental import pallas as pl
from jax.experimental.pallas import tpu as pltpu

_INV_SQRT2 = 1.0 / math.sqrt(2.0)


# ----------------------------- kernels ------------------------------------ #
def _reduce_fc_kernel(x_ref, w_down_ref, b_down_ref, w_up_ref, b_up_ref, s_ref,
                      *, inv_hw, hw_total, hwt, has_tail, use_mxu):
    """Fused per-batch spatial mean + SE excitation.

    x_ref     : (1, C, HWt)  input tile (any float dtype)
    w_down_ref: (Cr, C)      torch-layout down weight (tiny full block, resident)
    b_down_ref: (Cr, 1)
    w_up_ref  : (C, Cr)      torch-layout up weight
    b_up_ref  : (C, 1)
    s_ref     : (1, C, 1)    f32 output; doubles as the sum accumulator across HW tiles
    """
    t = pl.program_id(1)

    @pl.when(t == 0)
    def _init():
        s_ref[...] = jnp.zeros_like(s_ref)

    x = x_ref[0]                                                     # (C, HWt)
    if has_tail:
        # mask the padded lanes of the (cdiv) tail tile before reducing
        lane = lax.broadcasted_iota(jnp.int32, x.shape, 1)
        x = jnp.where(t * hwt + lane < hw_total, x, jnp.zeros_like(x))

    if use_mxu:
        # MXU reduce: (C, HWt) @ (HWt, 1) -> (C, 1) with f32 accumulation.  The MXU
        # is otherwise idle here and eats bf16 natively (no per-vreg f32 cast).
        ones_col = jnp.ones((x.shape[1], 1), dtype=x.dtype)
        part = jnp.dot(x, ones_col, preferred_element_type=jnp.float32)
    else:
        # f32 input: exact f32 lane reduce (VPU adds + one XLU op per 8-channel row).
        part = jnp.sum(x.astype(jnp.float32), axis=-1, keepdims=True)
    s_ref[0] = s_ref[0] + part

    @pl.when(t == pl.num_programs(1) - 1)
    def _finalize():
        # Column-vector FC fused into the finalize: the few hundred FLOPs are free
        # and the scale is written straight into the output block.
        mean = s_ref[0] * inv_hw                                     # (C, 1)
        h = jnp.dot(w_down_ref[...], mean,
                    preferred_element_type=jnp.float32) + b_down_ref[...]   # (Cr, 1)
        h = h * 0.5 * (1.0 + lax.erf(h * _INV_SQRT2))                # exact GELU
        z = jnp.dot(w_up_ref[...], h,
                    preferred_element_type=jnp.float32) + b_up_ref[...]     # (C, 1)
        s_ref[0] = jax.nn.sigmoid(z)


def _scale_kernel(s_ref, x_ref, o_ref):
    """out_tile = x_tile * scale; the (C,1) scale broadcasts over the lane (spatial) axis.

    The multiply runs in the input dtype (bf16 stays bf16 on v6e/v7x VPUs)."""
    o_ref[0] = x_ref[0] * s_ref[0].astype(o_ref.dtype)


# ----------------------------- wrapper ------------------------------------ #
def _chip_tile_params():
    """(target tile bytes, vmem_limit_bytes) per TPU generation."""
    try:
        kind = jax.devices()[0].device_kind.lower()
    except Exception:
        kind = ""
    if "v7" in kind or "7x" in kind:
        # 64 MiB physical VMEM: ~6 MiB tiles -> pass 2 (in+out double-buffered) ~24 MiB.
        return 6 << 20, 48 << 20
    if "v6" in kind or "trillium" in kind:
        return 4 << 20, 64 << 20
    # v5e and unknown chips: stay under the 16 MiB scoped-VMEM default.
    return 2 << 20, None


def _pick_hw_tile(c, hw, itemsize, target_bytes):
    """Lane-tile size (multiple of 128) so a (C, hwt) block is ~<= target_bytes."""
    row_bytes = max(1, c * itemsize)
    if hw * row_bytes <= target_bytes or hw <= 128:
        return hw                       # whole HW fits in one tile
    max_t = max(128, (target_bytes // row_bytes) // 128 * 128)
    if hw % 128 == 0:
        t = max_t
        while t >= 128:                 # largest exact divisor <= max_t (no tail)
            if hw % t == 0:
                return t
            t -= 128
    return max_t                        # non-divisor: grid uses cdiv + tail masking


def attention_avg_pool(x, w_down, b_down, w_up, b_up, *, hw_tile=None):
    """SE block.  x:(B,C,H,W); torch-layout weights w_down:(Cr,C), b_down:(Cr,),
    w_up:(C,Cr), b_up:(C,)."""
    B, C, H, W = x.shape
    Cr = w_down.shape[0]
    HW = H * W
    x_flat = x.reshape(B, C, HW)
    itemsize = jnp.dtype(x.dtype).itemsize

    target_bytes, vmem_limit = _chip_tile_params()
    hwt = hw_tile if hw_tile is not None else _pick_hw_tile(C, HW, itemsize, target_bytes)
    if hwt >= HW:
        hwt = HW
    elif hwt % 128 != 0:                # keep the (8,128) lane constraint
        hwt = max(128, (hwt // 128) * 128)
        if hwt >= HW:
            hwt = HW
    nt = pl.cdiv(HW, hwt)
    has_tail = (HW % hwt) != 0
    use_mxu = jnp.dtype(x.dtype) != jnp.dtype(jnp.float32)

    w_down = w_down.astype(jnp.float32)
    b_down = b_down.astype(jnp.float32).reshape(Cr, 1)
    w_up = w_up.astype(jnp.float32)
    b_up = b_up.astype(jnp.float32).reshape(C, 1)

    x_bytes = x_flat.size * itemsize

    # ---- pass 1: fused spatial-mean reduce + SE excitation -----------------
    # TODO(synk): for batch-1 v7x inference, split the HW axis into a 2-way "parallel"
    # sub-axis with two partial accumulators so both TensorCores share the reduce.
    scales = pl.pallas_call(
        functools.partial(_reduce_fc_kernel, inv_hw=1.0 / HW, hw_total=HW,
                          hwt=hwt, has_tail=has_tail, use_mxu=use_mxu),
        out_shape=jax.ShapeDtypeStruct((B, C, 1), jnp.float32),
        grid_spec=pltpu.PrefetchScalarGridSpec(
            num_scalar_prefetch=0,
            grid=(B, nt),
            in_specs=[
                pl.BlockSpec((1, C, hwt), lambda b, t: (b, 0, t)),
                pl.BlockSpec((Cr, C), lambda b, t: (0, 0)),
                pl.BlockSpec((Cr, 1), lambda b, t: (0, 0)),
                pl.BlockSpec((C, Cr), lambda b, t: (0, 0)),
                pl.BlockSpec((C, 1), lambda b, t: (0, 0)),
            ],
            out_specs=pl.BlockSpec((1, C, 1), lambda b, t: (b, 0, 0)),
        ),
        compiler_params=pltpu.CompilerParams(
            dimension_semantics=("parallel", "arbitrary"),
            vmem_limit_bytes=vmem_limit),
        cost_estimate=pl.CostEstimate(
            flops=2 * B * C * HW + 4 * B * C * Cr,
            transcendentals=B * (C + Cr),
            bytes_accessed=x_bytes + B * C * 4),
    )(x_flat, w_down, b_down, w_up, b_up)

    # ---- pass 2: broadcast scale over streamed HW tiles ---------------------
    # (If a trace shows exposed DMA here on v7x, add pipeline_mode=pl.Buffered(3)
    #  on the x spec — trades VMEM headroom for a smoother read/write interleave.)
    out = pl.pallas_call(
        _scale_kernel,
        out_shape=jax.ShapeDtypeStruct((B, C, HW), x.dtype),
        grid_spec=pltpu.PrefetchScalarGridSpec(
            num_scalar_prefetch=0,
            grid=(B, nt),
            in_specs=[
                pl.BlockSpec((1, C, 1), lambda b, t: (b, 0, 0)),
                pl.BlockSpec((1, C, hwt), lambda b, t: (b, 0, t)),
            ],
            out_specs=pl.BlockSpec((1, C, hwt), lambda b, t: (b, 0, t)),
        ),
        compiler_params=pltpu.CompilerParams(
            dimension_semantics=("parallel", "parallel"),
            vmem_limit_bytes=vmem_limit),
        cost_estimate=pl.CostEstimate(
            flops=B * C * HW,
            transcendentals=0,
            bytes_accessed=2 * x_bytes + B * C * 4),
    )(scales, x_flat)

    return out.reshape(B, C, H, W)


# ----------------------------- reference ----------------------------------- #
def _reference(x, w_down, b_down, w_up, b_up):
    y = jnp.mean(x.astype(jnp.float32), axis=(2, 3))           # (B, C)
    h = y @ w_down.T + b_down
    h = h * 0.5 * (1.0 + lax.erf(h * _INV_SQRT2))
    s = jax.nn.sigmoid(h @ w_up.T + b_up)                      # (B, C)
    return (x * s[:, :, None, None].astype(x.dtype)).astype(x.dtype)


if __name__ == "__main__":
    # module config (as used inside GCM): dim = C, reduction = 4
    B, C, H, W = 2, 16, 16, 16
    reduction = 4
    Cr = C // reduction

    key = jax.random.PRNGKey(0)
    kx, k1, k2, k3, k4 = jax.random.split(key, 5)

    x = jax.random.normal(kx, (B, C, H, W), dtype=jnp.float32)

    # deterministic nn.Linear-style init (uniform +-1/sqrt(fan_in)), torch (out,in) layout
    lim1 = 1.0 / math.sqrt(C)
    lim2 = 1.0 / math.sqrt(Cr)
    w_down = jax.random.uniform(k1, (Cr, C), jnp.float32, -lim1, lim1)
    b_down = jax.random.uniform(k2, (Cr,), jnp.float32, -lim1, lim1)
    w_up = jax.random.uniform(k3, (C, Cr), jnp.float32, -lim2, lim2)
    b_up = jax.random.uniform(k4, (C,), jnp.float32, -lim2, lim2)

    ref = _reference(x, w_down, b_down, w_up, b_up)

    # default tile choice (single HW tile at this toy size)
    out = jax.block_until_ready(attention_avg_pool(x, w_down, b_down, w_up, b_up))
    assert out.shape == (B, C, H, W)
    assert jnp.allclose(out, ref, atol=1e-5, rtol=1e-5), "mismatch (single-tile path)"

    # multi-tile accumulator path (2 tiles of 128 lanes)
    out_tiled = jax.block_until_ready(
        attention_avg_pool(x, w_down, b_down, w_up, b_up, hw_tile=128))
    assert jnp.allclose(out_tiled, ref, atol=1e-5, rtol=1e-5), "mismatch (multi-tile path)"

    # non-divisor HW (cdiv grid + masked tail): H*W = 320, tiles of 128 -> 128+128+64
    x_tail = jax.random.normal(kx, (B, C, 16, 20), dtype=jnp.float32)
    ref_tail = _reference(x_tail, w_down, b_down, w_up, b_up)
    out_tail = jax.block_until_ready(
        attention_avg_pool(x_tail, w_down, b_down, w_up, b_up, hw_tile=128))
    assert jnp.allclose(out_tail, ref_tail, atol=1e-5, rtol=1e-5), "mismatch (tail path)"

    # bf16 input exercises the MXU dot-with-ones reduce (f32 accumulation on the MXU)
    x_bf16 = x.astype(jnp.bfloat16)
    ref_bf16 = _reference(x_bf16, w_down, b_down, w_up, b_up)
    out_bf16 = jax.block_until_ready(
        attention_avg_pool(x_bf16, w_down, b_down, w_up, b_up, hw_tile=128))
    assert out_bf16.dtype == jnp.bfloat16
    assert jnp.allclose(out_bf16.astype(jnp.float32), ref_bf16.astype(jnp.float32),
                        atol=2e-2, rtol=2e-2), "mismatch (bf16 / MXU-reduce path)"

    print("KERNEL_OK")
</pallas_src>

<mosaic_0001>
module attributes {stable_mosaic.version = 11 : i64} {
  func.func @_reduce_fc_kernel(%arg0: i32, %arg1: i32, %arg2: memref<1x16x256xf32, #tpu.memory_space<vmem>>, %arg3: memref<4x16xf32, #tpu.memory_space<vmem>>, %arg4: memref<4x1xf32, #tpu.memory_space<vmem>>, %arg5: memref<16x4xf32, #tpu.memory_space<vmem>>, %arg6: memref<16x1xf32, #tpu.memory_space<vmem>>, %arg7: memref<1x16x1xf32, #tpu.memory_space<vmem>>) attributes {dimension_semantics = [#tpu.dimension_semantics<parallel>, #tpu.dimension_semantics<arbitrary>], iteration_bounds = array<i64: 2, 1>, scalar_prefetch = 0 : i64, scratch_operands = 0 : i64, tpu.core_type = #tpu.core_type<tc>, window_params = [{transform_indices = @transform_0, window_bounds = array<i64: 1, 16, 256>}, {pipeline_mode = #tpu.pipeline_mode<synchronous>, transform_indices = @transform_1, window_bounds = array<i64: 4, 16>}, {pipeline_mode = #tpu.pipeline_mode<synchronous>, transform_indices = @transform_2, window_bounds = array<i64: 4, 1>}, {pipeline_mode = #tpu.pipeline_mode<synchronous>, transform_indices = @transform_3, window_bounds = array<i64: 16, 4>}, {pipeline_mode = #tpu.pipeline_mode<synchronous>, transform_indices = @transform_4, window_bounds = array<i64: 16, 1>}, {transform_indices = @transform_5, window_bounds = array<i64: 1, 16, 1>}]} {
    %c0_i32 = arith.constant 0 : i32
    %0 = arith.cmpi eq, %arg1, %c0_i32 : i32
    %1 = arith.extui %0 : i1 to i32
    %c0_i32_0 = arith.constant 0 : i32
    %2 = arith.cmpi ne, %1, %c0_i32_0 : i32
    scf.if %2 {
      %cst_11 = arith.constant 0.000000e+00 : f32
      %16 = vector.broadcast %cst_11 : f32 to vector<1x16x1xf32>
      %c0_12 = arith.constant 0 : index
      %c0_13 = arith.constant 0 : index
      %c0_14 = arith.constant 0 : index
      %17 = vector.load %arg7[%c0_12, %c0_13, %c0_14] : memref<1x16x1xf32, #tpu.memory_space<vmem>>, vector<1x16x1xf32>
      tpu.vector_store %arg7[%c0_12, %c0_13, %c0_14], %16 {strides = array<i32>} : memref<1x16x1xf32, #tpu.memory_space<vmem>>, vector<1x16x1xf32>,
    } else {
    }
    %c0 = arith.constant 0 : index
    %c0_1 = arith.constant 0 : index
    %c0_2 = arith.constant 0 : index
    %3 = vector.load %arg2[%c0, %c0_1, %c0_2] : memref<1x16x256xf32, #tpu.memory_space<vmem>>, vector<1x16x256xf32>
    %4 = vector.shape_cast %3 : vector<1x16x256xf32> to vector<16x256xf32>
    %cst = arith.constant dense<0.000000e+00> : vector<16xf32>
    %5 = vector.multi_reduction <add>, %4, %cst [1] : vector<16x256xf32> to vector<16xf32>
    %6 = vector.shape_cast %5 : vector<16xf32> to vector<16x1xf32>
    %c0_3 = arith.constant 0 : index
    %c0_4 = arith.constant 0 : index
    %c0_5 = arith.constant 0 : index
    %7 = vector.load %arg7[%c0_3, %c0_4, %c0_5] : memref<1x16x1xf32, #tpu.memory_space<vmem>>, vector<1x16x1xf32>
    %8 = vector.shape_cast %7 : vector<1x16x1xf32> to vector<16x1xf32>
    %9 = arith.addf %8, %6 : vector<16x1xf32>
    %c0_6 = arith.constant 0 : index
    %c0_7 = arith.constant 0 : index
    %c0_8 = arith.constant 0 : index
    %10 = vector.load %arg7[%c0_6, %c0_7, %c0_8] : memref<1x16x1xf32, #tpu.memory_space<vmem>>, vector<1x16x1xf32>
    %11 = vector.shape_cast %10 : vector<1x16x1xf32> to vector<16x1xf32>
    %12 = vector.shape_cast %9 : vector<16x1xf32> to vector<1x16x1xf32>
    tpu.vector_store %arg7[%c0_6, %c0_7, %c0_8], %12 {strides = array<i32>} : memref<1x16x1xf32, #tpu.memory_space<vmem>>, vector<1x16x1xf32>,
    %c0_i32_9 = arith.constant 0 : i32
    %13 = arith.cmpi eq, %arg1, %c0_i32_9 : i32
    %14 = arith.extui %13 : i1 to i32
    %c0_i32_10 = arith.constant 0 : i32
    %15 = arith.cmpi ne, %14, %c0_i32_10 : i32
    scf.if %15 {
      %c0_11 = arith.constant 0 : index
      %c0_12 = arith.constant 0 : index
      %c0_13 = arith.constant 0 : index
      %16 = vector.load %arg7[%c0_11, %c0_12, %c0_13] : memref<1x16x1xf32, #tpu.memory_space<vmem>>, vector<1x16x1xf32>
      %17 = vector.shape_cast %16 : vector<1x16x1xf32> to vector<16x1xf32>
      %cst_14 = arith.constant 3.906250e-03 : f32
      %18 = vector.broadcast %cst_14 : f32 to vector<16x1xf32>
      %19 = arith.mulf %17, %18 : vector<16x1xf32>
      %c0_15 = arith.constant 0 : index
      %c0_16 = arith.constant 0 : index
      %20 = vector.load %arg3[%c0_15, %c0_16] : memref<4x16xf32, #tpu.memory_space<vmem>>, vector<4x16xf32>
      %cst_17 = arith.constant dense<0.000000e+00> : vector<4x1xf32>
      %21 = tpu.matmul %20, %19, %cst_17 {dimension_numbers = #tpu.dot_dimension_numbers<[1], [0], [0], [1], [0, 0, 1, 1], [], []>} : vector<4x16xf32>, vector<16x1xf32>, vector<4x1xf32> -> vector<4x1xf32>
      %c0_18 = arith.constant 0 : index
      %c0_19 = arith.constant 0 : index
      %22 = vector.load %arg4[%c0_18, %c0_19] : memref<4x1xf32, #tpu.memory_space<vmem>>, vector<4x1xf32>
      %23 = arith.addf %21, %22 : vector<4x1xf32>
      %cst_20 = arith.constant 5.000000e-01 : f32
      %24 = vector.broadcast %cst_20 : f32 to vector<4x1xf32>
      %25 = arith.mulf %23, %24 : vector<4x1xf32>
      %cst_21 = arith.constant 0.707106769 : f32
      %26 = vector.broadcast %cst_21 : f32 to vector<4x1xf32>
      %27 = arith.mulf %23, %26 : vector<4x1xf32>
      %28 = math.erf %27 : vector<4x1xf32>
      %cst_22 = arith.constant 1.000000e+00 : f32
      %29 = vector.broadcast %cst_22 : f32 to vector<4x1xf32>
      %30 = arith.addf %29, %28 : vector<4x1xf32>
      %31 = arith.mulf %25, %30 : vector<4x1xf32>
      %c0_23 = arith.constant 0 : index
      %c0_24 = arith.constant 0 : index
      %32 = vector.load %arg5[%c0_23, %c0_24] : memref<16x4xf32, #tpu.memory_space<vmem>>, vector<16x4xf32>
      %cst_25 = arith.constant dense<0.000000e+00> : vector<16x1xf32>
      %33 = tpu.matmul %32, %31, %cst_25 {dimension_numbers = #tpu.dot_dimension_numbers<[1], [0], [0], [1], [0, 0, 1, 1], [], []>} : vector<16x4xf32>, vector<4x1xf32>, vector<16x1xf32> -> vector<16x1xf32>
      %c0_26 = arith.constant 0 : index
      %c0_27 = arith.constant 0 : index
      %34 = vector.load %arg6[%c0_26, %c0_27] : memref<16x1xf32, #tpu.memory_space<vmem>>, vector<16x1xf32>
      %35 = arith.addf %33, %34 : vector<16x1xf32>
      %36 = arith.negf %35 : vector<16x1xf32>
      %37 = math.exp %36 : vector<16x1xf32>
      %cst_28 = arith.constant 1.000000e+00 : f32
      %38 = vector.broadcast %cst_28 : f32 to vector<16x1xf32>
      %39 = arith.addf %38, %37 : vector<16x1xf32>
      %40 = arith.divf %38, %39 : vector<16x1xf32>
      %c0_29 = arith.constant 0 : index
      %c0_30 = arith.constant 0 : index
      %c0_31 = arith.constant 0 : index
      %41 = vector.load %arg7[%c0_29, %c0_30, %c0_31] : memref<1x16x1xf32, #tpu.memory_space<vmem>>, vector<1x16x1xf32>
      %42 = vector.shape_cast %41 : vector<1x16x1xf32> to vector<16x1xf32>
      %43 = vector.shape_cast %40 : vector<16x1xf32> to vector<1x16x1xf32>
      tpu.vector_store %arg7[%c0_29, %c0_30, %c0_31], %43 {strides = array<i32>} : memref<1x16x1xf32, #tpu.memory_space<vmem>>, vector<1x16x1xf32>,
    } else {
    }
    return
  }
  func.func @transform_0(%arg0: i32, %arg1: i32) -> (i32, i32, i32) {
    %c0_i32 = arith.constant 0 : i32
    %c0_i32_0 = arith.constant 0 : i32
    return %arg0, %c0_i32, %arg1 : i32, i32, i32
  }
  func.func @transform_1(%arg0: i32, %arg1: i32) -> (i32, i32) {
    %c0_i32 = arith.constant 0 : i32
    %c0_i32_0 = arith.constant 0 : i32
    %c0_i32_1 = arith.constant 0 : i32
    return %c0_i32, %c0_i32_0 : i32, i32
  }
  func.func @transform_2(%arg0: i32, %arg1: i32) -> (i32, i32) {
    %c0_i32 = arith.constant 0 : i32
    %c0_i32_0 = arith.constant 0 : i32
    %c0_i32_1 = arith.constant 0 : i32
    return %c0_i32, %c0_i32_0 : i32, i32
  }
  func.func @transform_3(%arg0: i32, %arg1: i32) -> (i32, i32) {
    %c0_i32 = arith.constant 0 : i32
    %c0_i32_0 = arith.constant 0 : i32
    %c0_i32_1 = arith.constant 0 : i32
    return %c0_i32, %c0_i32_0 : i32, i32
  }
  func.func @transform_4(%arg0: i32, %arg1: i32) -> (i32, i32) {
    %c0_i32 = arith.constant 0 : i32
    %c0_i32_0 = arith.constant 0 : i32
    %c0_i32_1 = arith.constant 0 : i32
    return %c0_i32, %c0_i32_0 : i32, i32
  }
  func.func @transform_5(%arg0: i32, %arg1: i32) -> (i32, i32, i32) {
    %c0_i32 = arith.constant 0 : i32
    %c0_i32_0 = arith.constant 0 : i32
    %c0_i32_1 = arith.constant 0 : i32
    return %arg0, %c0_i32, %c0_i32_0 : i32, i32, i32
  }
}

</mosaic_0001>

<bundles_post_ra>
// kernel: tpu_custom_call.1
= control target key start
LH: loop header
LB: loop body
LE: loop exit
PB: predicated region body
PF: predicated region fallthrough
CT: control target
= control target key end

     0   :  { %10 = vsyncpa [#allocation3], 0  ;;  %s948_s0 = inlined_call_operand.hbm [shape: f32[2,16,256], index: 0, kind: input, shape index: {}]   ;;  %s949_s1 = inlined_call_operand.vmem [shape: f32[4,16], index: 1, kind: input, shape index: {}]   ;;  %s950_s2 = inlined_call_operand.vmem [shape: f32[4,1], index: 2, kind: input, shape index: {}]   ;;  %s951_s3 = inlined_call_operand.vmem [shape: f32[16,4], index: 3, kind: input, shape index: {}]   ;;  %s952_s4 = inlined_call_operand.vmem [shape: f32[16,1], index: 4, kind: input, shape index: {}]   ;;  %s953_s5 = inlined_call_operand.vmem [shape: f32[2,16,1], index: 5, kind: output, shape index: {}]  }
   0x1   :  { %12 = vsyncpa [#allocation3 + $0x1], 0  ;;  %s786_s18 = smov 0   ;;  %s788_s19 = smov 0  }
   0x2   :  { %s790_s20 = smov 0   ;;  %s792_s21 = smov 0  }
   0x3   :  { %s794_s22 = smov 0   ;;  %s796_s23 = smov 0  }
   0x4 LB: > { %s556_s24 = sadd.s32 4294967295, %s748_s23   ;;  %s30_s25 = sadd.s32 1, %s744_s22  ;;  %s748_s23 = sphi %s796_s23, %s18_s23   ;;  %s744_s22 = sphi %s794_s22, %s961_s22   ;;  %s740_s21 = sphi %s792_s21, %s960_s21   ;;  %s736_s20 = sphi %s790_s20, %s959_s20   ;;  %s732_s19 = sphi %s788_s19, %s958_s19   ;;  %s728_s18 = sphi %s786_s18, %s957_s18  }
   0x5   : > { %p32_p0 = scmp.ge.s32.totalorder %s30_s25, 2  ;;  %s39_s26 = sadd.s32 1, %s736_s20 }
   0x6   : > { %p46_p1 = scmp.ne.s32.totalorder %s736_s20, %s732_s19  ;;  %p47_p2 = scmp.eq.s32.totalorder %s748_s23, 0 }
   0x7   : > { %s963_s25 = smov (%p32_p0, %s30_s25), 0  ;;  %p52_p4 = scmp.ne.s32.totalorder %s732_s19, %s728_s18 }
   0x8   : > { %p822_p3 = por %p47_p2, %p46_p1  ;;  %s34_s28 = ssub.s32 %s744_s22, %s963_s25 }
   0x9   : > { %p53_p5 = scmp.eq.s32.totalorder %s556_s24, 0  ;;  %p37_p6 = scmp.eq.s32.totalorder %s34_s28, 0 }
   0xa   : > { %p604_p8 = scmp.lt.s32.totalorder %s748_s23, 2  ;;  %s198_s6 = sand.u32 1, %s736_s20  }
   0xb   : > { %p829_p7 = por %p53_p5, %p52_p4  ;;  %s575_s7 = sshll.u32 %s744_s22, 9 }
   0xc   : > { %s835_s30 = scalar_select %p37_p6, %s736_s20, %s39_s26  }
   0xd   : > { %s560_s8 = sshll.u32 %s198_s6, 5  ;;  %s842_s11 = scalar_lea.hbm %s948_s0, %s575_s7 }
   0xe   : > { %s202_s12 = scalar_lea.vmem [#allocation2], %s560_s8  ;;  %p846_p9 = pnand %p604_p8, %p822_p3 }
   0xf   : > { %s211_s13 = sshll.u32 %s202_s12, 4  ;;  %s852_s15 = scalar_lea.sflag [#allocation3], %s198_s6  ;;  %s850_s13 = int_to_ptr.vmem [resolvable:$true] %s211_s13 }
  0x10   : > { %s668_s16 = scalar_lea.hbm %s842_s11, 512  ;;  %p670_p11 = pneg %p846_p9 }
  0x11   : > { %p669_p10 = scmp.ne.s32.totalorder %s842_s11, %s668_s16  ;;  %s673_s24 = scalar_lea.hbm %s948_s0, 1024 }
  0x12   : > { %p674_p0 = scmp.lt.u32.totalorder %s842_s11, %s948_s0  ;;  %p675_p1 = scmp.lt.u32.totalorder %s673_s24, %s668_s16 }
  0x13   : > { %p671_p12 = pnand %p670_p11, %p669_p10  ;;  %p677_p3 = scmp.lt.u32.totalorder %s668_s16, %s842_s11 }
  0x14   : > { %p676_p2 = por %p675_p1, %p674_p0 }
  0x15   : > { %p672_p13 = pneg %p671_p12 }
  0x16   : > { %p678_p4 = por %p677_p3, %p676_p2 }
  0x18   : > { %p679_p5 = pnand %p678_p4, %p672_p13 }
  0x1a   : > { %682 = shalt.err (!%p679_p5)
}
  0x1b   : > { %s683_s28 = scalar_lea.vmem %s850_s13, 512  ;;  %s750_s6 = smov [#allocation2]  }
  0x1c   : > { %p684_p6 = scmp.ne.s32.totalorder %s850_s13, %s683_s28  ;;  %s688_s7 = sshll.u32 %s750_s6, 4  ;;  %s689_s7 = int_to_ptr.vmem [resolvable:$false] %s688_s7 }
  0x1d   : > { %s690_s8 = scalar_lea.vmem %s689_s7, 1024  ;;  %p691_p12 = scmp.lt.s32.totalorder %s850_s13, %s689_s7 }
  0x1e   : > { %p686_p8 = pnand %p684_p6, %p670_p11  ;;  %p692_p0 = scmp.lt.s32.totalorder %s690_s8, %s683_s28 }
  0x20   : > { %p687_p10 = pneg %p686_p8  ;;  %p693_p1 = por %p692_p0, %p691_p12 }
  0x22   : > { %p694_p2 = pnand %p693_p1, %p687_p10 }
  0x24   : > { %697 = shalt.err (!%p694_p2)
}
  0x25   : > { %s751_s9 = smov 256   ;;  %s752_s10 = smov 16  }
  0x26   : > { %603 = dma.hbm_to_vmem [thread:$0]  (!%p846_p9), %s842_s11, 512, %s850_s13, %s852_s15, %s751_s9, %s751_s9, %s752_s10  }
  0x27   : > { %p563_p11 = scmp.ge.s32.totalorder %s748_s23, 1  ;;  %p219_p13 = scmp.lt.s32.totalorder %s748_s23, 3 }
  0x29   : > { %p220_p3 = pnand %p563_p11, %p219_p13 }
  0x2a   : > { %s225_s12 = sand.u32 (!%p220_p3), 1, %s732_s19  }
  0x2b   : > { %223 = sbr.rel (%p220_p3) target bundleno = 692 (0x2b4), region = 40  ;;  %s564_s16 = sshll.u32 (!%p220_p3), %s225_s12, 5 }
  0x2c   : > { %s226_s17 = scalar_lea.sflag (!%p220_p3), [#allocation3], %s225_s12  ;;  %s229_s18 = scalar_lea.vmem (!%p220_p3), [#allocation2], %s564_s16 }
  0x32   : > { %723 = dma.done.wait (%p829_p7), %s226_s17, 512  }
  0x33   : > { %725 = vsyncadd (%p829_p7), %s226_s17, 4294966784  ;;  %p257_p4 = scmp.lt.s32.totalorder %s740_s21, 1  ;;  %vm266_vm0 = vcmask 7168   ;;  %v753_v0 = vmov 0.0   ;;  %v269_v1 = vld [vmem:[%s229_s18] sm:$0xff]  ;;  %v270_v2 = vld [vmem:[%s229_s18 + $0x8] sm:$0xff] }
  0x34   : > { %v271_v3 = vld [vmem:[%s229_s18 + $0x10] sm:$0xff]  ;;  %v273_v4 = vadd.f32 %v270_v2, %v269_v1  ;;  %v272_v5 = vld [vmem:[%s229_s18 + $0x18] sm:$0xff]  ;;  %v754_v7 = vmov 0.0|0.0   ;;  %vm755_vm1 = vmmov 0   ;;  %v293_v19 = vld [vmem:[%s949_s1] sm:$0xf] }
  0x35   : > { %s965_s21 = smov (!%p257_p4, %s740_s21), 1  ;;  %v276_v6 = vadd.f32 %v272_v5, %v271_v3  ;;  %595 = vmatprep.subr.bf16.mxu0 %v754_v7  ;;  %587 = vmatprep.mubr.msk.f32.mxu0 %vm755_vm1, %v753_v0  ;;  %vm295_vm2 = vcmask 130048   ;;  %v374_v20 = vld [vmem:[%s951_s3] sm:$0xff]  ;;  %vm378_vm3 = vcmask 31744   ;;  %vm385_vm4 = vcmask 1043456   ;;  %v375_v30 = vld [vmem:[%s951_s3 + $0x8] sm:$0xff] }
  0x36   : > { %s576_s11 = sshll.u32 %s965_s21, 4  ;;  %274 = vadd.xlane.f32.xlu0 %v273_v4  ;;  %592 = vmatprep.mubr.msk.f32.mxu1 %vm378_vm3, %v374_v20  ;;  %v294_v21 = vld [vmem:[%s950_s2] sm:$0xf]  ;;  %v377_v31 = vld [vmem:[%s952_s4 + $0x8] sm:$0xff] }
  0x37   : > { %s892_s15 = scalar_lea.vmem %s953_s5, %s576_s11  ;;  %v376_v32 = vld [vmem:[%s952_s4] sm:$0xff] }
  0x38   : > { %267 = vst.msk [vmem:[%s892_s15] sm:$0xff] %vm266_vm0, %v753_v0  ;;  %268 = vst.msk [vmem:[%s892_s15 + $0x8] sm:$0xff] %vm266_vm0, %v753_v0 }
  0x3a   : > { %277 = vadd.xlane.f32.xlu0 %v276_v6 }
  0x3f   : > { %v279_v8 = vld [vmem:[%s892_s15] sm:$0xff]  ;;  %v280_v11 = vld [vmem:[%s892_s15 + $0x8] sm:$0xff] }
  0xc3   : > { %v275_v9 = vpop.xlane.xlu0 %274 }
  0xc4   : > { %v281_v10 = vadd.f32 %v279_v8, %v275_v9 }
  0xc6   : > { %284 = vst.msk [vmem:[%s892_s15] sm:$0xff] %vm266_vm0, %v281_v10 }
  0xc7   : > { %v278_v12 = vpop.xlane.xlu0 %277 }
  0xc8   : > { %v282_v13 = vadd.f32 %v280_v11, %v278_v12 }
  0xca   : > { %285 = vst.msk [vmem:[%s892_s15 + $0x8] sm:$0xff] %vm266_vm0, %v282_v13 }
  0xcd   : > { %v289_v14 = vld [vmem:[%s892_s15] sm:$0xff] }
  0xce   : > { %v291_v16 = vmul.f32 0.00390625, %v289_v14 }
  0xd1   : > { %v290_v15 = vld [vmem:[%s892_s15 + $0x8] sm:$0xff] }
  0xd2   : > { %v292_v17 = vmul.f32 0.00390625, %v290_v15 }
  0xd4   : > { %v596_v18 = vpack.c.bf16 %v292_v17, %v291_v16 }
  0xd6   : > { %597 = vmatpush3.bf16.msra.mxu0 %v596_v18 }
  0xd9   : > { %588 = vmatmul.mubr.msk.f32.vlgmr.msra.gmra.mrb[0].mxu0 %vm295_vm2, %v293_v19 }
 0x1ac   : > { %v365_v22 = vpop.f32.mrb[0].mxu0 }
 0x1ad   : > { %v366_v23 = vadd.f32 %v365_v22, %v294_v21  ;;  %v589_v24 = vpop.f32.mrb[1].mxu0 }
 0x1af   : > { %v370_v25 = vmul.f32 0.70710677, %v366_v23  ;;  %v369_v27 = vmul.f32 0.5, %v366_v23 }
 0x1b1   : > { %658 = verf.f32 %v370_v25 }
 0x1bb   : > { %v659_v26 = vpop.eup %658 }
 0x1bc   : > { %v372_v28 = vadd.f32 1.0, %v659_v26 }
 0x1be   : > { %v373_v29 = vmul.f32 %v372_v28, %v369_v27 }
 0x1c0   : > { %590 = vmatprep.subr.msk.mxu1 %vm385_vm4, %v373_v29 }
 0x1c1   : > { %591 = vmatpush3.msk.msra.mxu1 %vm385_vm4, %v373_v29 }
 0x1c2   : > { %593 = vmatmul.mubr.msk.f32.vlgmr.msra.gmra.mrb[0].mxu1 %vm378_vm3, %v375_v30 }
 0x295   : > { %v594_v33 = vpop.f32.mrb[0].mxu1 }
 0x296   : > { %v461_v34 = vadd.f32 %v594_v33, %v377_v31  ;;  %v455_v35 = vpop.f32.mrb[1].mxu1 }
 0x297   : > { %v456_v36 = vadd.f32 %v455_v35, %v376_v32 }
 0x298   : > { %v572_v37 = vmul.f32 -1.442695, %v461_v34 }
 0x299   : > { %v571_v38 = vmul.f32 -1.442695, %v456_v36 }
 0x29a   : > { %660 = vpow2.f32 %v572_v37 }
 0x29b   : > { %662 = vpow2.f32 %v571_v38 }
 0x2a4   : > { %v661_v39 = vpop.eup %660 }
 0x2a5   : > { %v663_v40 = vpop.eup %662  ;;  %v471_v41 = vadd.f32 1.0, %v661_v39 }
 0x2a6   : > { %v470_v42 = vadd.f32 1.0, %v663_v40 }
 0x2a7   : > { %664 = vrcp.f32 %v471_v41 }
 0x2a8   : > { %666 = vrcp.f32 %v470_v42 }
 0x2b1   : > { %v665_v43 = vpop.eup %664 }
 0x2b2   : > { %v667_v44 = vpop.eup %666  ;;  %477 = vst.msk [vmem:[%s892_s15 + $0x8] sm:$0xff] %vm266_vm0, %v665_v43 }
 0x2b3   : > { %476 = vst.msk [vmem:[%s892_s15] sm:$0xff] %vm266_vm0, %v667_v44 }
 0x2b4 PF: > { %s18_s23 = sadd.s32 1, %s748_s23   ;;  %s957_s18 = smov %s732_s19 }
 0x2b5   : > { %p15_p7 = scmp.ge.s32.totalorder %s18_s23, 4   ;;  %s958_s19 = smov %s736_s20 }
 0x2b6   : > { %s959_s20 = smov %s835_s30  ;;  %s960_s21 = smov %s744_s22 }
 0x2b7   : > { %s961_s22 = smov %s963_s25  ;;  %17 = sbr.rel (!%p15_p7) target bundleno = 4 (0x4), region = 88 }
 0x2be   :  { %499 = vsyncpa [#allocation3], 1 }
 0x2bf   :  { %501 = vsyncpa [#allocation3 + $0x1], 1 }

</bundles_post_ra>
